<compile_context>
chip_gen: v7x
topology: tpu7x:2x2x1
jax: 0.10.0
libtpu: 0.0.40
codegen_flags: <defaults>
</compile_context>

<pallas_src>
import functools

import jax
import jax.numpy as jnp
import numpy as np
from jax.experimental import pallas as pl
from jax.experimental.pallas import tpu as pltpu


def _decoder_kernel(z_ref, w1_ref, b1_ref, w2_ref, b2_ref, w3_ref, b3_ref,
                    o_ref):
    # Cast the f32 activation tile to the MXU dtype on the VPU (hidden under
    # the DMA); three MXU matmuls with f32 accumulation; f32 epilogues.
    z = z_ref[...].astype(w1_ref.dtype)

    h1 = jnp.dot(z, w1_ref[...], preferred_element_type=jnp.float32)
    h1 = jnp.maximum(h1 + b1_ref[...], 0.0)                    # ReLU (f32)
    h1 = h1.astype(w2_ref.dtype)                               # back to MXU dtype

    h2 = jnp.dot(h1, w2_ref[...], preferred_element_type=jnp.float32)
    h2 = jnp.maximum(h2 + b2_ref[...], 0.0)                    # ReLU (f32)
    h2 = h2.astype(w3_ref.dtype)

    h3 = jnp.dot(h2, w3_ref[...], preferred_element_type=jnp.float32)
    h3 = h3 + b3_ref[...]

    # sigmoid(x) = 1 / (1 + exp(-x)): exp on the EUP, reciprocal via vrcp
    # (approx) so the divide stays off the VALU slots.  Clip keeps exp()
    # finite for extreme pre-activations (sigmoid saturates there anyway).
    e = jnp.exp(-jnp.clip(h3, -30.0, 30.0))
    o_ref[...] = pl.reciprocal(1.0 + e, approx=True).astype(o_ref.dtype)


def _round_up(x, m):
    return ((x + m - 1) // m) * m


def _pick_block_b(B, latent, h4, h2, out, out_itemsize):
    """VMEM-aware batch-tile choice.

    Per-row VMEM ~= double-buffered f32 z + double-buffered output + f32
    intermediates (+ bf16 copies fed to the next matmul) -- only ~2.5 KB/row
    at these dims, so tiles of a few thousand rows fit comfortably even under
    v7x's 64 MiB VMEM.
    """
    row_bytes = (2 * latent * 4 + 2 * out * out_itemsize
                 + (h4 + h2 + out) * 4 + (h4 + h2) * 2)
    vmem_budget = 40 * 1024 * 1024            # headroom under v7x's 64 MiB
    cap = max(16, min(4096, (vmem_budget // row_bytes) // 16 * 16))

    if B <= 128:
        # Launch-overhead dominated; one (possibly padded) tile.
        return min(cap, _round_up(B, 16))

    # >= 2 grid steps so both v7x TensorCores get work; prefer an even count.
    block_b = min(cap, _round_up(pl.cdiv(B, 2), 16))
    steps = pl.cdiv(B, block_b)
    if steps > 2 and steps % 2 == 1:
        block_b = min(cap, _round_up(pl.cdiv(B, steps + 1), 16))
    return block_b


@functools.partial(jax.jit, static_argnames=("block_b", "out_dtype"))
def _decoder_pallas(z, w1, b1, w2, b2, w3, b3, *, block_b, out_dtype):
    B, latent = z.shape
    h4 = w1.shape[1]
    h2 = w2.shape[1]
    out = w3.shape[1]
    out_itemsize = np.dtype(out_dtype).itemsize
    wbytes = w1.dtype.itemsize

    grid = (pl.cdiv(B, block_b),)

    # z / output tiles stream across the grid; weights & biases are grid-
    # invariant (constant index_map -> resident in VMEM, no per-step re-DMA).
    in_specs = [
        pl.BlockSpec((block_b, latent), lambda i: (i, 0)),   # z tile (f32)
        pl.BlockSpec((latent, h4), lambda i: (0, 0)),        # w1
        pl.BlockSpec((1, h4), lambda i: (0, 0)),             # b1 (f32)
        pl.BlockSpec((h4, h2), lambda i: (0, 0)),            # w2
        pl.BlockSpec((1, h2), lambda i: (0, 0)),             # b2 (f32)
        pl.BlockSpec((h2, out), lambda i: (0, 0)),           # w3
        pl.BlockSpec((1, out), lambda i: (0, 0)),            # b3 (f32)
    ]
    out_specs = pl.BlockSpec((block_b, out), lambda i: (i, 0))

    # VMEM estimate: double-buffered streaming tiles + (double-buffered)
    # resident weights/biases + intermediates.  ALWAYS set the scoped limit
    # (v5e default is 16 MiB) and clamp to v7x's 64 MiB physical VMEM.
    vmem_needed = (
        2 * block_b * (latent * 4 + out * out_itemsize)       # z + out streams
        + 2 * (latent * h4 + h4 * h2 + h2 * out) * wbytes     # weights
        + 2 * (h4 + h2 + out) * 4                             # biases
        + block_b * ((h4 + h2 + out) * 4 + (h4 + h2) * 2)     # intermediates
    )
    vmem_limit = min(max(vmem_needed + (8 << 20), 32 << 20), 64 << 20)

    flops = 2 * B * (latent * h4 + h4 * h2 + h2 * out)
    bytes_accessed = (B * latent * 4
                      + (latent * h4 + h4 * h2 + h2 * out) * wbytes
                      + (h4 + h2 + out) * 4
                      + B * out * out_itemsize)

    return pl.pallas_call(
        _decoder_kernel,
        out_shape=jax.ShapeDtypeStruct((B, out), out_dtype),
        grid=grid,
        in_specs=in_specs,
        out_specs=out_specs,
        compiler_params=pltpu.CompilerParams(
            dimension_semantics=("parallel",),
            vmem_limit_bytes=vmem_limit),
        cost_estimate=pl.CostEstimate(
            flops=flops, transcendentals=B * out,
            bytes_accessed=bytes_accessed),
    )(z, w1, b1, w2, b2, w3, b3)


def prepare_decoder_params(params, use_bf16=True):
    """Cast weights to the MXU dtype ONCE, outside the per-call hot path.

    Biases stay f32 (the bias/ReLU/sigmoid epilogue runs in f32).
    """
    wdt = jnp.bfloat16 if use_bf16 else jnp.float32
    return {
        "w1": params["w1"].astype(wdt), "b1": params["b1"].astype(jnp.float32),
        "w2": params["w2"].astype(wdt), "b2": params["b2"].astype(jnp.float32),
        "w3": params["w3"].astype(wdt), "b3": params["b3"].astype(jnp.float32),
    }


def decoder_forward(z, params, block_b=None, out_dtype=jnp.float32):
    """Run the fused decoder MLP as a single Pallas kernel.

    z:       (B, latent_size) float32 (cast to the MXU dtype inside the kernel)
    params:  prepared params (see prepare_decoder_params); weights stored
             transposed (in_features, out_features), biases (1, out_features).
    Returns: (B, out_size) in out_dtype (f32 default, bf16 optional).
    """
    B, latent = z.shape
    h4 = params["w1"].shape[1]
    h2 = params["w2"].shape[1]
    out = params["w3"].shape[1]
    if block_b is None:
        block_b = _pick_block_b(B, latent, h4, h2, out,
                                np.dtype(out_dtype).itemsize)
    return _decoder_pallas(z, params["w1"], params["b1"], params["w2"],
                           params["b2"], params["w3"], params["b3"],
                           block_b=block_b, out_dtype=out_dtype)


def init_decoder_params(key, latent_size, out_size):
    """Deterministic init mirroring nn.Linear defaults (uniform +/- 1/sqrt(fan_in)).

    Weights are stored transposed: (in_features, out_features).
    """
    h4 = out_size // 4
    h2 = out_size // 2

    def linear_init(k, fan_in, fan_out):
        kw, kb = jax.random.split(k)
        bound = 1.0 / jnp.sqrt(fan_in)
        w = jax.random.uniform(kw, (fan_in, fan_out), jnp.float32,
                               minval=-bound, maxval=bound)
        b = jax.random.uniform(kb, (1, fan_out), jnp.float32,
                               minval=-bound, maxval=bound)
        return w, b

    k1, k2, k3 = jax.random.split(key, 3)
    w1, b1 = linear_init(k1, latent_size, h4)
    w2, b2 = linear_init(k2, h4, h2)
    w3, b3 = linear_init(k3, h2, out_size)
    return {"w1": w1, "b1": b1, "w2": w2, "b2": b2, "w3": w3, "b3": b3}


def decoder_reference(z, params):
    """Pure-JAX f32 reference for correctness checking."""
    h1 = jnp.maximum(z @ params["w1"] + params["b1"], 0.0)
    h2 = jnp.maximum(h1 @ params["w2"] + params["b2"], 0.0)
    h3 = h2 @ params["w3"] + params["b3"]
    return jax.nn.sigmoid(h3)


if __name__ == "__main__":
    latent_size = 32
    out_size = 128      # -> hidden layers of 32 and 64

    key = jax.random.PRNGKey(0)
    kz, kp, kz2 = jax.random.split(key, 3)
    params_f32 = init_decoder_params(kp, latent_size, out_size)
    params = prepare_decoder_params(params_f32, use_bf16=True)   # cast ONCE

    # Case 1: small batch -> single (padded) tile, f32 output.
    z_small = jax.random.normal(kz, (8, latent_size), jnp.float32)
    out_small = jax.block_until_ready(decoder_forward(z_small, params))
    ref_small = decoder_reference(z_small, params_f32)
    assert out_small.shape == (8, out_size) and out_small.dtype == jnp.float32
    # bf16 matmul inputs with f32 accumulation -> loosened tolerance.
    assert jnp.max(jnp.abs(out_small - ref_small)) < 2e-2, "small-batch mismatch"

    # Case 2: larger batch -> 2 grid steps (both v7x TCs), padded last tile.
    z_big = jax.random.normal(kz2, (600, latent_size), jnp.float32)
    out_big = jax.block_until_ready(decoder_forward(z_big, params))
    ref_big = decoder_reference(z_big, params_f32)
    assert out_big.shape == (600, out_size)
    assert jnp.max(jnp.abs(out_big - ref_big)) < 2e-2, "large-batch mismatch"

    # Case 3: optional bf16-output path (halves the dominant HBM stream).
    out_bf16 = jax.block_until_ready(
        decoder_forward(z_big, params, out_dtype=jnp.bfloat16))
    assert out_bf16.dtype == jnp.bfloat16
    assert jnp.max(jnp.abs(out_bf16.astype(jnp.float32) - ref_big)) < 2e-2, \
        "bf16-output mismatch"

    print("KERNEL_OK")
</pallas_src>

<mosaic_0001>
module attributes {stable_mosaic.version = 11 : i64} {
  func.func @_decoder_kernel(%arg0: i32, %arg1: memref<16x32xf32, #tpu.memory_space<vmem>>, %arg2: memref<32x32xbf16, #tpu.memory_space<vmem>>, %arg3: memref<1x32xf32, #tpu.memory_space<vmem>>, %arg4: memref<32x64xbf16, #tpu.memory_space<vmem>>, %arg5: memref<1x64xf32, #tpu.memory_space<vmem>>, %arg6: memref<64x128xbf16, #tpu.memory_space<vmem>>, %arg7: memref<1x128xf32, #tpu.memory_space<vmem>>, %arg8: memref<16x128xf32, #tpu.memory_space<vmem>>) attributes {dimension_semantics = [#tpu.dimension_semantics<parallel>], iteration_bounds = array<i64: 1>, scalar_prefetch = 0 : i64, scratch_operands = 0 : i64, tpu.core_type = #tpu.core_type<tc>, window_params = [{transform_indices = @transform_0, window_bounds = array<i64: 16, 32>}, {pipeline_mode = #tpu.pipeline_mode<synchronous>, transform_indices = @transform_1, window_bounds = array<i64: 32, 32>}, {pipeline_mode = #tpu.pipeline_mode<synchronous>, transform_indices = @transform_2, window_bounds = array<i64: 1, 32>}, {pipeline_mode = #tpu.pipeline_mode<synchronous>, transform_indices = @transform_3, window_bounds = array<i64: 32, 64>}, {pipeline_mode = #tpu.pipeline_mode<synchronous>, transform_indices = @transform_4, window_bounds = array<i64: 1, 64>}, {pipeline_mode = #tpu.pipeline_mode<synchronous>, transform_indices = @transform_5, window_bounds = array<i64: 64, 128>}, {pipeline_mode = #tpu.pipeline_mode<synchronous>, transform_indices = @transform_6, window_bounds = array<i64: 1, 128>}, {transform_indices = @transform_7, window_bounds = array<i64: 16, 128>}]} {
    %c0 = arith.constant 0 : index
    %c0_0 = arith.constant 0 : index
    %0 = vector.load %arg1[%c0, %c0_0] : memref<16x32xf32, #tpu.memory_space<vmem>>, vector<16x32xf32>
    %1 = arith.truncf %0 : vector<16x32xf32> to vector<16x32xbf16>
    %c0_1 = arith.constant 0 : index
    %c0_2 = arith.constant 0 : index
    %2 = vector.load %arg2[%c0_1, %c0_2] : memref<32x32xbf16, #tpu.memory_space<vmem>>, vector<32x32xbf16>
    %cst = arith.constant dense<0.000000e+00> : vector<16x32xf32>
    %3 = tpu.matmul %1, %2, %cst {dimension_numbers = #tpu.dot_dimension_numbers<[1], [0], [0], [1], [0, 0, 1, 1], [], []>} : vector<16x32xbf16>, vector<32x32xbf16>, vector<16x32xf32> -> vector<16x32xf32>
    %c0_3 = arith.constant 0 : index
    %c0_4 = arith.constant 0 : index
    %4 = vector.load %arg3[%c0_3, %c0_4] : memref<1x32xf32, #tpu.memory_space<vmem>>, vector<1x32xf32>
    %5 = vector.broadcast %4 : vector<1x32xf32> to vector<16x32xf32>
    %6 = arith.addf %3, %5 : vector<16x32xf32>
    %cst_5 = arith.constant 0.000000e+00 : f32
    %7 = vector.broadcast %cst_5 : f32 to vector<16x32xf32>
    %8 = arith.maximumf %6, %7 : vector<16x32xf32>
    %9 = arith.truncf %8 : vector<16x32xf32> to vector<16x32xbf16>
    %c0_6 = arith.constant 0 : index
    %c0_7 = arith.constant 0 : index
    %10 = vector.load %arg4[%c0_6, %c0_7] : memref<32x64xbf16, #tpu.memory_space<vmem>>, vector<32x64xbf16>
    %cst_8 = arith.constant dense<0.000000e+00> : vector<16x64xf32>
    %11 = tpu.matmul %9, %10, %cst_8 {dimension_numbers = #tpu.dot_dimension_numbers<[1], [0], [0], [1], [0, 0, 1, 1], [], []>} : vector<16x32xbf16>, vector<32x64xbf16>, vector<16x64xf32> -> vector<16x64xf32>
    %c0_9 = arith.constant 0 : index
    %c0_10 = arith.constant 0 : index
    %12 = vector.load %arg5[%c0_9, %c0_10] : memref<1x64xf32, #tpu.memory_space<vmem>>, vector<1x64xf32>
    %13 = vector.broadcast %12 : vector<1x64xf32> to vector<16x64xf32>
    %14 = arith.addf %11, %13 : vector<16x64xf32>
    %cst_11 = arith.constant 0.000000e+00 : f32
    %15 = vector.broadcast %cst_11 : f32 to vector<16x64xf32>
    %16 = arith.maximumf %14, %15 : vector<16x64xf32>
    %17 = arith.truncf %16 : vector<16x64xf32> to vector<16x64xbf16>
    %c0_12 = arith.constant 0 : index
    %c0_13 = arith.constant 0 : index
    %18 = vector.load %arg6[%c0_12, %c0_13] : memref<64x128xbf16, #tpu.memory_space<vmem>>, vector<64x128xbf16>
    %cst_14 = arith.constant dense<0.000000e+00> : vector<16x128xf32>
    %19 = tpu.matmul %17, %18, %cst_14 {dimension_numbers = #tpu.dot_dimension_numbers<[1], [0], [0], [1], [0, 0, 1, 1], [], []>} : vector<16x64xbf16>, vector<64x128xbf16>, vector<16x128xf32> -> vector<16x128xf32>
    %c0_15 = arith.constant 0 : index
    %c0_16 = arith.constant 0 : index
    %20 = vector.load %arg7[%c0_15, %c0_16] : memref<1x128xf32, #tpu.memory_space<vmem>>, vector<1x128xf32>
    %21 = vector.broadcast %20 : vector<1x128xf32> to vector<16x128xf32>
    %22 = arith.addf %19, %21 : vector<16x128xf32>
    %cst_17 = arith.constant -3.000000e+01 : f32
    %cst_18 = arith.constant 3.000000e+01 : f32
    %23 = vector.broadcast %cst_17 : f32 to vector<16x128xf32>
    %24 = arith.maximumf %23, %22 : vector<16x128xf32>
    %25 = vector.broadcast %cst_18 : f32 to vector<16x128xf32>
    %26 = arith.minimumf %25, %24 : vector<16x128xf32>
    %cst_19 = arith.constant 0.000000e+00 : f32
    %27 = vector.broadcast %cst_19 : f32 to vector<16x128xf32>
    %28 = arith.subf %27, %26 : vector<16x128xf32>
    %29 = math.exp %28 : vector<16x128xf32>
    %cst_20 = arith.constant 1.000000e+00 : f32
    %30 = vector.broadcast %cst_20 : f32 to vector<16x128xf32>
    %31 = arith.addf %30, %29 : vector<16x128xf32>
    %32 = tpu.reciprocal %31 {approx = true} : vector<16x128xf32> -> vector<16x128xf32>
    %c0_21 = arith.constant 0 : index
    %c0_22 = arith.constant 0 : index
    %33 = vector.load %arg8[%c0_21, %c0_22] : memref<16x128xf32, #tpu.memory_space<vmem>>, vector<16x128xf32>
    tpu.vector_store %arg8[%c0_21, %c0_22], %32 {strides = array<i32>} : memref<16x128xf32, #tpu.memory_space<vmem>>, vector<16x128xf32>,
    return
  }
  func.func @transform_0(%arg0: i32) -> (i32, i32) {
    %c0_i32 = arith.constant 0 : i32
    %c0_i32_0 = arith.constant 0 : i32
    return %arg0, %c0_i32 : i32, i32
  }
  func.func @transform_1(%arg0: i32) -> (i32, i32) {
    %c0_i32 = arith.constant 0 : i32
    %c0_i32_0 = arith.constant 0 : i32
    %c0_i32_1 = arith.constant 0 : i32
    return %c0_i32, %c0_i32_0 : i32, i32
  }
  func.func @transform_2(%arg0: i32) -> (i32, i32) {
    %c0_i32 = arith.constant 0 : i32
    %c0_i32_0 = arith.constant 0 : i32
    %c0_i32_1 = arith.constant 0 : i32
    return %c0_i32, %c0_i32_0 : i32, i32
  }
  func.func @transform_3(%arg0: i32) -> (i32, i32) {
    %c0_i32 = arith.constant 0 : i32
    %c0_i32_0 = arith.constant 0 : i32
    %c0_i32_1 = arith.constant 0 : i32
    return %c0_i32, %c0_i32_0 : i32, i32
  }
  func.func @transform_4(%arg0: i32) -> (i32, i32) {
    %c0_i32 = arith.constant 0 : i32
    %c0_i32_0 = arith.constant 0 : i32
    %c0_i32_1 = arith.constant 0 : i32
    return %c0_i32, %c0_i32_0 : i32, i32
  }
  func.func @transform_5(%arg0: i32) -> (i32, i32) {
    %c0_i32 = arith.constant 0 : i32
    %c0_i32_0 = arith.constant 0 : i32
    %c0_i32_1 = arith.constant 0 : i32
    return %c0_i32, %c0_i32_0 : i32, i32
  }
  func.func @transform_6(%arg0: i32) -> (i32, i32) {
    %c0_i32 = arith.constant 0 : i32
    %c0_i32_0 = arith.constant 0 : i32
    %c0_i32_1 = arith.constant 0 : i32
    return %c0_i32, %c0_i32_0 : i32, i32
  }
  func.func @transform_7(%arg0: i32) -> (i32, i32) {
    %c0_i32 = arith.constant 0 : i32
    %c0_i32_0 = arith.constant 0 : i32
    return %arg0, %c0_i32 : i32, i32
  }
}

</mosaic_0001>

<bundles_post_ra>
// kernel: _decoder_pallas.1
= control target key start
LH: loop header
LB: loop body
LE: loop exit
PB: predicated region body
PF: predicated region fallthrough
CT: control target
= control target key end

     0   :  { %12 = vsyncpa [#allocation3], 0  ;;  %s690_s0 = inlined_call_operand.hbm [shape: f32[8,32], index: 0, kind: input, shape index: {}]   ;;  %s691_s1 = inlined_call_operand.hbm [shape: bf16[32,32], index: 1, kind: input, shape index: {}]   ;;  %s692_s2 = inlined_call_operand.vmem [shape: f32[1,32], index: 2, kind: input, shape index: {}]   ;;  %s693_s3 = inlined_call_operand.hbm [shape: bf16[32,64], index: 3, kind: input, shape index: {}]   ;;  %s694_s4 = inlined_call_operand.vmem [shape: f32[1,64], index: 4, kind: input, shape index: {}]   ;;  %s695_s5 = inlined_call_operand.hbm [shape: bf16[64,128], index: 5, kind: input, shape index: {}]   ;;  %s696_s6 = inlined_call_operand.vmem [shape: f32[1,128], index: 6, kind: input, shape index: {}]   ;;  %s697_s7 = inlined_call_operand.hbm [shape: f32[8,128], index: 7, kind: output, shape index: {}]  }
   0x1   :  { %13 = vsyncpa [#allocation6], 0 }
   0x2   :  { %14 = vsyncpa [#allocation9], 0 }
   0x3   :  { %15 = vsyncpa [#allocation4], 0 }
   0x4   :  { %20 = vsyncadd [#allocation3], 128  ;;  %s546_s24 = smov [#allocation5]   ;;  %s428_s28 = scalar_lea.hbm %s691_s1, 256 }
   0x5   :  { %s33_s25 = sshll.u32 %s546_s24, 4  ;;  %p429_p0 = scmp.ne.s32.totalorder %s691_s1, %s428_s28  ;;  %s34_s25 = int_to_ptr.vmem [resolvable:$true] %s33_s25 }
   0x6   :  { %p432_p1 = scmp.lt.u32.totalorder %s428_s28, %s691_s1 }
   0x8   :  { %p434_p2 = pnand %p432_p1, %p429_p0 }
   0xa   :  { %437 = shalt.err (!%p434_p2)
}
   0xb   :  { %s438_s10 = scalar_lea.vmem %s34_s25, 256  ;;  %p443_p4 = scmp.lt.s32.totalorder %s34_s25, %s34_s25 }
   0xc   :  { %p439_p3 = scmp.ne.s32.totalorder %s34_s25, %s438_s10  ;;  %p444_p5 = scmp.lt.s32.totalorder %s438_s10, %s438_s10 }
   0xe   :  { %p445_p6 = por %p444_p5, %p443_p4 }
  0x10   :  { %p446_p7 = pnand %p445_p6, %p439_p3 }
  0x12   :  { %449 = shalt.err (!%p446_p7)
}
  0x13   :  { %s547_s11 = smov 64   ;;  %s548_s12 = smov 4  }
  0x14   :  { %39 = dma.hbm_to_vmem [thread:$0]  %s691_s1, 256, %s34_s25, [#allocation6], %s547_s11, %s547_s11, %s548_s12  }
  0x15   :  { %s549_s15 = smov [#allocation2]   ;;  %s450_s19 = scalar_lea.hbm %s690_s0, 128 }
  0x16   :  { %s21_s16 = sshll.u32 %s549_s15, 4  ;;  %p451_p8 = scmp.ne.s32.totalorder %s690_s0, %s450_s19  ;;  %s22_s16 = int_to_ptr.vmem [resolvable:$true] %s21_s16 }
  0x17   :  { %p454_p9 = scmp.lt.u32.totalorder %s450_s19, %s690_s0 }
  0x19   :  { %p456_p10 = pnand %p454_p9, %p451_p8 }
  0x1b   :  { %459 = shalt.err (!%p456_p10)
}
  0x1c   :  { %s460_s24 = scalar_lea.vmem %s22_s16, 128  ;;  %s464_s1 = scalar_lea.vmem %s22_s16, 256 }
  0x1d   :  { %p461_p11 = scmp.ne.s32.totalorder %s22_s16, %s460_s24  ;;  %p465_p12 = scmp.lt.s32.totalorder %s22_s16, %s22_s16 }
  0x1e   :  { %p466_p13 = scmp.lt.s32.totalorder %s464_s1, %s460_s24 }
  0x20   :  { %p467_p0 = por %p466_p13, %p465_p12 }
  0x22   :  { %p468_p1 = pnand %p467_p0, %p461_p11 }
  0x24   :  { %471 = shalt.err (!%p468_p1)
}
  0x25   :  { %s550_s25 = smov 128   ;;  %s551_s26 = smov 8  }
  0x26   :  { %27 = dma.hbm_to_vmem [thread:$0]  %s690_s0, 128, %s22_s16, [#allocation3], %s550_s25, %s550_s25, %s551_s26  }
  0x27   :  { %s552_s29 = smov [#allocation7]   ;;  %s553_s8 = smov [#allocation8]  }
  0x28   :  { %s47_s30 = sshll.u32 %s552_s29, 4  ;;  %s61_s9 = sshll.u32 %s553_s8, 4  ;;  %s48_s30 = int_to_ptr.vmem [resolvable:$true] %s47_s30  ;;  %s627_s9 = int_to_ptr.vmem [resolvable:$true] %s61_s9 }
  0x29   :  { %s472_s14 = scalar_lea.hbm %s693_s3, 256 }
  0x2a   :  { %p473_p2 = scmp.ne.s32.totalorder %s693_s3, %s472_s14  ;;  %p476_p3 = scmp.lt.u32.totalorder %s472_s14, %s693_s3 }
  0x2c   :  { %p478_p4 = pnand %p476_p3, %p473_p2 }
  0x2e   :  { %481 = shalt.err (!%p478_p4)
}
  0x2f   :  { %s482_s0 = scalar_lea.vmem %s48_s30, 256  ;;  %p487_p6 = scmp.lt.s32.totalorder %s48_s30, %s48_s30 }
  0x30   :  { %p483_p5 = scmp.ne.s32.totalorder %s48_s30, %s482_s0  ;;  %p488_p7 = scmp.lt.s32.totalorder %s482_s0, %s482_s0 }
  0x32   :  { %p489_p8 = por %p488_p7, %p487_p6 }
  0x34   :  { %p490_p9 = pnand %p489_p8, %p483_p5 }
  0x36   :  { %493 = shalt.err (!%p490_p9)
}
  0x37   :  { %53 = dma.hbm_to_vmem [thread:$0]  %s693_s3, 256, %s48_s30, [#allocation6], %s547_s11, %s547_s11, %s548_s12  }
  0x38   :  { %s494_s23 = scalar_lea.hbm %s695_s5, 512 }
  0x39   :  { %p495_p10 = scmp.ne.s32.totalorder %s695_s5, %s494_s23  ;;  %p498_p11 = scmp.lt.u32.totalorder %s494_s23, %s695_s5 }
  0x3b   :  { %p500_p12 = pnand %p498_p11, %p495_p10 }
  0x3d   :  { %503 = shalt.err (!%p500_p12)
}
  0x3e   :  { %s504_s29 = scalar_lea.vmem %s627_s9, 512  ;;  %p509_p0 = scmp.lt.s32.totalorder %s627_s9, %s627_s9 }
  0x3f   :  { %p505_p13 = scmp.ne.s32.totalorder %s627_s9, %s504_s29  ;;  %p510_p1 = scmp.lt.s32.totalorder %s504_s29, %s504_s29 }
  0x41   :  { %p511_p2 = por %p510_p1, %p509_p0 }
  0x43   :  { %p512_p3 = pnand %p511_p2, %p505_p13 }
  0x45   :  { %515 = shalt.err (!%p512_p3)
}
  0x46   :  { %67 = dma.hbm_to_vmem [thread:$0]  %s695_s5, 512, %s627_s9, [#allocation9], %s547_s11, %s547_s11, %s548_s12  }
  0x47   :  { %538 = dma.done.wait [#allocation3], 256  }
  0x48   :  { %539 = vsyncadd [#allocation3], 4294967040 }
  0x49   :  { %540 = dma.done.wait [#allocation6], 512  }
  0x4a   :  { %541 = vsyncadd [#allocation6], 4294966784 }
  0x4b   :  { %542 = dma.done.wait [#allocation9], 512  }
  0x4c   :  { %543 = vsyncadd [#allocation9], 4294966784  ;;  %v554_v0 = vmov 0.0   ;;  %vm555_vm0 = vmmov 0   ;;  %v412_v1 = vld [vmem:[#allocation5] sm:$0xff]   ;;  %v413_v2 = vld [vmem:[#allocation5 + $0x8] sm:$0xff]  }
  0x4d   :  { %373 = vmatprep.subr.bf16.mxu1 %v554_v0  ;;  %377 = vmatprep.mubr.msk.bf16.mxu1 %vm555_vm0, %v554_v0  ;;  %v83_v3 = vld [vmem:[#allocation2] sm:$0xff]  ;;  %v84_v4 = vld [vmem:[#allocation2 + $0x8] sm:$0xff]  ;;  %vm109_vm1 = vcmask 261120   ;;  %v416_v8 = vld [vmem:[#allocation8] sm:$0xff]   ;;  %vm266_vm2 = vcmask 523264  }
  0x4e   :  { %389 = vmatprep.subr.bf16.mxu0 %v554_v0  ;;  %397 = vmatprep.mubr.msk.bf16.mxu0 %vm555_vm0, %v554_v0  ;;  %v85_v5 = vpack.c.bf16 %v84_v4, %v83_v3  ;;  %v414_v6 = vld [vmem:[#allocation7] sm:$0xff]   ;;  %v415_v7 = vld [vmem:[#allocation7 + $0x8] sm:$0xff]   ;;  %v417_v9 = vld [vmem:[#allocation8 + $0x8] sm:$0xff]  }
  0x4f   :  { %374 = vmatpush3.bf16.msra.mxu1 %v412_v1  ;;  %390 = vmatpush3.bf16.msra.mxu0 %v416_v8  ;;  %v346_v10 = vld [vmem:[%s692_s2] ss:$0 sm:$0xff]  ;;  %v419_v21 = vld [vmem:[#allocation8 + $0x18] sm:$0xff]  }
  0x50   :  { %375 = vmatprep.subr.bf16.mxu1 %v554_v0  ;;  %391 = vmatprep.subr.bf16.mxu0 %v554_v0  ;;  %v418_v20 = vld [vmem:[#allocation8 + $0x10] sm:$0xff]  }
  0x51   :  { %v350_v22 = vld [vmem:[%s694_s4] ss:$0 sm:$0xff] }
  0x52   :  { %v354_v32 = vld [vmem:[%s696_s6] ss:$0 sm:$0xff] }
  0x53   :  { %376 = vmatpush3.bf16.msra.mxu1 %v413_v2  ;;  %392 = vmatpush3.bf16.msra.mxu0 %v417_v9 }
  0x54   :  { %381 = vmatprep.subr.bf16.mxu1 %v554_v0  ;;  %393 = vmatprep.subr.bf16.mxu0 %v554_v0 }
  0x56   :  { %378 = vmatmul.mubr.msk.bf16.vlgmr.msra.gmra.mrb[0].mxu1 %vm109_vm1, %v85_v5 }
  0x57   :  { %385 = vmatprep.mubr.msk.bf16.mxu1 %vm555_vm0, %v554_v0  ;;  %382 = vmatpush3.bf16.msra.mxu1 %v414_v6 }
  0x58   :  { %383 = vmatprep.subr.bf16.mxu1 %v554_v0  ;;  %394 = vmatpush3.bf16.msra.mxu0 %v418_v20 }
  0x59   :  { %395 = vmatprep.subr.bf16.mxu0 %v554_v0 }
  0x5b   :  { %384 = vmatpush3.bf16.msra.mxu1 %v415_v7 }
  0x5c   :  { %396 = vmatpush3.bf16.msra.mxu0 %v419_v21 }
 0x129   :  { %v147_v11 = vpop.f32.mrb[0].mxu1 }
 0x12a   :  { %v148_v12 = vadd.f32 %v346_v10, %v147_v11  ;;  %v379_v13 = vpop.f32.mrb[1].mxu1 }
 0x12b   :  { %v150_v14 = vpop.f32.mrb[2].mxu1 }
 0x12c   :  { %v151_v15 = vadd.f32 %v346_v10, %v150_v14  ;;  %v380_v16 = vpop.f32.mrb[3].mxu1  ;;  %v154_v17 = vmax.f32 %v148_v12, 0.0 }
 0x12e   :  { %v155_v18 = vmax.f32 %v151_v15, 0.0 }
 0x130   :  { %v156_v19 = vpack.c.bf16 %v155_v18, %v154_v17 }
 0x132   :  { %386 = vmatmul.mubr.msk.bf16.vlgmr.msra.gmra.mrb[4].mxu1 %vm109_vm1, %v156_v19 }
 0x205   :  { %v217_v23 = vpop.f32.mrb[4].mxu1 }
 0x206   :  { %v218_v24 = vadd.f32 %v350_v22, %v217_v23  ;;  %v387_v25 = vpop.f32.mrb[5].mxu1 }
 0x207   :  { %v220_v26 = vpop.f32.mrb[6].mxu1 }
 0x208   :  { %v221_v27 = vadd.f32 %v350_v22, %v220_v26  ;;  %v388_v28 = vpop.f32.mrb[7].mxu1  ;;  %v224_v29 = vmax.f32 %v218_v24, 0.0 }
 0x20a   :  { %v225_v30 = vmax.f32 %v221_v27, 0.0 }
 0x20c   :  { %v226_v31 = vpack.c.bf16 %v225_v30, %v224_v29 }
 0x20e   :  { %398 = vmatmul.mubr.msk.bf16.vlgmr.msra.gmra.mrb[0].mxu0 %vm266_vm2, %v226_v31 }
 0x2e1   :  { %v304_v33 = vpop.f32.mrb[0].mxu0 }
 0x2e2   :  { %v305_v34 = vadd.f32 %v354_v32, %v304_v33  ;;  %v399_v35 = vpop.f32.mrb[1].mxu0 }
 0x2e3   :  { %v307_v36 = vpop.f32.mrb[2].mxu0 }
 0x2e4   :  { %v360_v37 = vclamps-f32 %v305_v34, 30.0  ;;  %v308_v38 = vadd.f32 %v354_v32, %v307_v36  ;;  %v400_v39 = vpop.f32.mrb[3].mxu0 }
 0x2e6   :  { %v315_v40 = vsub.f32 0.0, %v360_v37  ;;  %v361_v41 = vclamps-f32 %v308_v38, 30.0 }
 0x2e8   :  { %v317_v42 = vmul.f32 1.442695, %v315_v40  ;;  %v316_v43 = vsub.f32 0.0, %v361_v41 }
 0x2ea   :  { %420 = vpow2.f32 %v317_v42  ;;  %v319_v44 = vmul.f32 1.442695, %v316_v43 }
 0x2ec   :  { %422 = vpow2.f32 %v319_v44 }
 0x2f4   :  { %v421_v45 = vpop.eup %420 }
 0x2f5   :  { %v321_v46 = vadd.f32 1.0, %v421_v45 }
 0x2f6   :  { %v423_v47 = vpop.eup %422 }
 0x2f7   :  { %424 = vrcp.f32 %v321_v46  ;;  %v322_v48 = vadd.f32 1.0, %v423_v47 }
 0x2f9   :  { %426 = vrcp.f32 %v322_v48 }
 0x301   :  { %v425_v49 = vpop.eup %424 }
 0x302   :  { %325 = vst [vmem:[#allocation10] sm:$0xff] %v425_v49 }
 0x303   :  { %v427_v50 = vpop.eup %426 }
 0x304   :  { %326 = vst [vmem:[#allocation10 + $0x8] sm:$0xff] %v427_v50 }
 0x305   :  { %331 = vsyncadd [#allocation4], 128  ;;  %s556_s4 = smov [#allocation10]  }
 0x306   :  { %s332_s6 = sshll.u32 %s556_s4, 4  ;;  %s333_s6 = int_to_ptr.vmem [resolvable:$true] %s332_s6 }
 0x307   :  { %s516_s10 = scalar_lea.vmem %s333_s6, 128  ;;  %s520_s13 = scalar_lea.vmem %s333_s6, 256 }
 0x308   :  { %p517_p4 = scmp.ne.s32.totalorder %s333_s6, %s516_s10  ;;  %p521_p5 = scmp.lt.s32.totalorder %s333_s6, %s333_s6 }
 0x309   :  { %p522_p6 = scmp.lt.s32.totalorder %s520_s13, %s516_s10 }
 0x30b   :  { %p523_p7 = por %p522_p6, %p521_p5 }
 0x30d   :  { %p524_p8 = pnand %p523_p7, %p517_p4 }
 0x30f   :  { %527 = shalt.err (!%p524_p8)
}
 0x310   :  { %s528_s17 = scalar_lea.hbm %s697_s7, 128 }
 0x311   :  { %p529_p9 = scmp.ne.s32.totalorder %s697_s7, %s528_s17  ;;  %p532_p10 = scmp.lt.u32.totalorder %s528_s17, %s697_s7 }
 0x313   :  { %p534_p11 = pnand %p532_p10, %p529_p9 }
 0x315   :  { %537 = shalt.err (!%p534_p11)
}
 0x316   :  { %338 = dma.vmem_to_hbm [thread:$0]  %s333_s6, 128, %s697_s7, [#allocation4], %s550_s25, %s550_s25, %s551_s26  }
 0x317   :  { %544 = dma.done.wait [#allocation4], 256  }
 0x318   :  { %545 = vsyncadd [#allocation4], 4294967040 }
 0x319   :  { %342 = vsyncpa [#allocation3], 1 }
 0x31a   :  { %343 = vsyncpa [#allocation6], 1 }
 0x31b   :  { %344 = vsyncpa [#allocation9], 1 }
 0x31c   :  { %345 = vsyncpa [#allocation4], 1 }

</bundles_post_ra>
